<compile_context>
chip_gen: v6e
topology: v6e:2x2x1
jax: 0.10.0
libtpu: 0.0.40
codegen_flags: <defaults>
</compile_context>

<pallas_src>
import jax
import jax.numpy as jnp
from jax.experimental import pallas as pl
from jax.experimental.pallas import tpu as pltpu

LANES = 128          # batch rows per lane group (vreg lane width)
BT_ROWS_MAX = 8192   # max batch rows per grid step (multiple of 8*LANES keeps vregs dense)


def _mlp_kernel(w1_ref, b1_ref, w2_ref, b2_ref, x_ref, o_ref):
    """One batch tile of the forward pass, batch-on-lanes.

    w1_ref: (2, 2)       SMEM  layer-0 weight, stored (in, out)
    b1_ref: (2,)         SMEM  layer-0 bias
    w2_ref: (2,)         SMEM  layer-1 weight (single output column)
    b2_ref: (1,)         SMEM  layer-1 bias
    x_ref : (2, RT, 128) VMEM  features x batch lane-groups
    o_ref : (RT, 128)    VMEM  one output value per batch row
    """
    x0 = x_ref[0]                      # (RT, 128)  feature 0 of RT*128 rows
    x1 = x_ref[1]                      # (RT, 128)  feature 1

    # layer 0: h_j = x0*w1[0,j] + x1*w1[1,j] + b1[j]  (VPU FMAs, scalars from SMEM)
    h0 = x0 * w1_ref[0, 0] + x1 * w1_ref[1, 0] + b1_ref[0]
    h1 = x0 * w1_ref[0, 1] + x1 * w1_ref[1, 1] + b1_ref[1]

    # sigmoid = 1 / (1 + exp(-h)); clamp keeps exp finite so the approx reciprocal
    # returns clean 0/1 even for extreme pre-activations.  exp + recip ride the EUP slot.
    h0 = jnp.clip(h0, -60.0, 60.0)
    h1 = jnp.clip(h1, -60.0, 60.0)
    s0 = pl.reciprocal(1.0 + jnp.exp(-h0), approx=True)
    s1 = pl.reciprocal(1.0 + jnp.exp(-h1), approx=True)

    # layer 1 + clip to [0, 1]
    y = s0 * w2_ref[0] + s1 * w2_ref[1] + b2_ref[0]
    o_ref[...] = jnp.clip(y, 0.0, 1.0)


def _round_up(n, m):
    return (n + m - 1) // m * m


@jax.jit
def simple_nn_forward(x, w1, b1, w2, b2):
    """x: (N, 2) f32; w1 (2,2)/b1 (2,), w2 (2,1)/b2 (1,) stored (in, out).

    Returns (N, 1) f32, matching SimpleNN.forward.
    """
    n = x.shape[0]
    x = x.astype(jnp.float32)

    # Rows per grid step: multiple of 8*128 so vregs stay dense; capped at BT_ROWS_MAX.
    # Worst-case row padding is < bt rows (tiny in absolute bytes for this kernel).
    bt = min(BT_ROWS_MAX, _round_up(n, 8 * LANES))
    n_pad = _round_up(n, bt)
    r_tot = n_pad // LANES              # total lane-groups
    rt = bt // LANES                    # lane-groups per grid step (multiple of 8)

    # Pad batch rows, go feature-major, fold batch into (r_tot, 128) lane groups.
    # The transpose is the only wrapper copy (~16 B/row); the reshape is free.
    xp = jnp.pad(x, ((0, n_pad - n), (0, 0)))
    xt = xp.T.reshape(2, r_tot, LANES)

    out = pl.pallas_call(
        _mlp_kernel,
        out_shape=jax.ShapeDtypeStruct((r_tot, LANES), jnp.float32),
        grid=(r_tot // rt,),
        in_specs=[
            pl.BlockSpec(memory_space=pltpu.MemorySpace.SMEM),   # w1 (scalars, resident)
            pl.BlockSpec(memory_space=pltpu.MemorySpace.SMEM),   # b1
            pl.BlockSpec(memory_space=pltpu.MemorySpace.SMEM),   # w2
            pl.BlockSpec(memory_space=pltpu.MemorySpace.SMEM),   # b2
            pl.BlockSpec((2, rt, LANES), lambda i: (0, i, 0)),   # x : tiled over batch
        ],
        out_specs=pl.BlockSpec((rt, LANES), lambda i: (i, 0)),
        compiler_params=pltpu.CompilerParams(
            dimension_semantics=("parallel",)),  # v7x: pltpu.CORE_PARALLEL is an option
    )(w1, b1, w2.reshape(2), b2, xt)

    # Compact 4 B/row slab -> (N, 1); reshape is free, slice only copies padded tail off.
    return out.reshape(n_pad, 1)[:n]


def _init_params(key):
    """Deterministic init mimicking nn.Linear shapes (weights stored as (in, out))."""
    k1, k2, k3, k4 = jax.random.split(key, 4)
    bound = 1.0 / jnp.sqrt(2.0)  # PyTorch Linear default: U(-1/sqrt(fan_in), +), fan_in=2
    w1 = jax.random.uniform(k1, (2, 2), jnp.float32, -bound, bound)
    b1 = jax.random.uniform(k2, (2,), jnp.float32, -bound, bound)
    w2 = jax.random.uniform(k3, (2, 1), jnp.float32, -bound, bound)
    b2 = jax.random.uniform(k4, (1,), jnp.float32, -bound, bound)
    return w1, b1, w2, b2


if __name__ == "__main__":
    key = jax.random.PRNGKey(0)
    kx, kp, kbig = jax.random.split(key, 3)

    w1, b1, w2, b2 = _init_params(kp)

    def reference(xs):
        h = jax.nn.sigmoid(xs @ w1 + b1)
        return jnp.clip(h @ w2 + b2, 0.0, 1.0)

    # Small batch (single grid step, heavy row padding).
    x = jax.random.normal(kx, (8, 2), jnp.float32)
    y = simple_nn_forward(x, w1, b1, w2, b2)
    jax.block_until_ready(y)
    assert y.shape == (8, 1)
    assert jnp.allclose(y, reference(x), atol=2e-3), (y, reference(x))

    # Batch exercising multiple 8192-row grid steps plus ragged row padding.
    x_big = jax.random.normal(kbig, (9000, 2), jnp.float32)
    y_big = simple_nn_forward(x_big, w1, b1, w2, b2)
    jax.block_until_ready(y_big)
    assert y_big.shape == (9000, 1)
    assert jnp.allclose(y_big, reference(x_big), atol=2e-3)

    print("KERNEL_OK")
</pallas_src>

<mosaic_0001>
module attributes {stable_mosaic.version = 11 : i64} {
  func.func @_mlp_kernel(%arg0: i32, %arg1: memref<2x2xf32, #tpu.memory_space<smem>>, %arg2: memref<2xf32, #tpu.memory_space<smem>>, %arg3: memref<2xf32, #tpu.memory_space<smem>>, %arg4: memref<1xf32, #tpu.memory_space<smem>>, %arg5: memref<2x8x128xf32, #tpu.memory_space<vmem>>, %arg6: memref<8x128xf32, #tpu.memory_space<vmem>>) attributes {dimension_semantics = [#tpu.dimension_semantics<parallel>], iteration_bounds = array<i64: 1>, scalar_prefetch = 0 : i64, scratch_operands = 0 : i64, tpu.core_type = #tpu.core_type<tc>, window_params = [{transform_indices = @transform_0, window_bounds = array<i64: 2, 2>}, {transform_indices = @transform_1, window_bounds = array<i64: 2>}, {transform_indices = @transform_2, window_bounds = array<i64: 2>}, {transform_indices = @transform_3, window_bounds = array<i64: 1>}, {transform_indices = @transform_4, window_bounds = array<i64: 2, 8, 128>}, {transform_indices = @transform_5, window_bounds = array<i64: 8, 128>}]} {
    %c0 = arith.constant 0 : index
    %c0_0 = arith.constant 0 : index
    %c0_1 = arith.constant 0 : index
    %0 = vector.load %arg5[%c0, %c0_0, %c0_1] : memref<2x8x128xf32, #tpu.memory_space<vmem>>, vector<1x8x128xf32>
    %1 = vector.shape_cast %0 : vector<1x8x128xf32> to vector<8x128xf32>
    %c1 = arith.constant 1 : index
    %c0_2 = arith.constant 0 : index
    %c0_3 = arith.constant 0 : index
    %2 = vector.load %arg5[%c1, %c0_2, %c0_3] : memref<2x8x128xf32, #tpu.memory_space<vmem>>, vector<1x8x128xf32>
    %3 = vector.shape_cast %2 : vector<1x8x128xf32> to vector<8x128xf32>
    %c0_4 = arith.constant 0 : index
    %c0_5 = arith.constant 0 : index
    %4 = memref.load %arg1[%c0_4, %c0_5] : memref<2x2xf32, #tpu.memory_space<smem>>
    %5 = vector.broadcast %4 : f32 to vector<8x128xf32>
    %6 = arith.mulf %1, %5 : vector<8x128xf32>
    %c1_6 = arith.constant 1 : index
    %c0_7 = arith.constant 0 : index
    %7 = memref.load %arg1[%c1_6, %c0_7] : memref<2x2xf32, #tpu.memory_space<smem>>
    %8 = vector.broadcast %7 : f32 to vector<8x128xf32>
    %9 = arith.mulf %3, %8 : vector<8x128xf32>
    %10 = arith.addf %6, %9 : vector<8x128xf32>
    %c0_8 = arith.constant 0 : index
    %11 = memref.load %arg2[%c0_8] : memref<2xf32, #tpu.memory_space<smem>>
    %12 = vector.broadcast %11 : f32 to vector<8x128xf32>
    %13 = arith.addf %10, %12 : vector<8x128xf32>
    %c0_9 = arith.constant 0 : index
    %c1_10 = arith.constant 1 : index
    %14 = memref.load %arg1[%c0_9, %c1_10] : memref<2x2xf32, #tpu.memory_space<smem>>
    %15 = vector.broadcast %14 : f32 to vector<8x128xf32>
    %16 = arith.mulf %1, %15 : vector<8x128xf32>
    %c1_11 = arith.constant 1 : index
    %c1_12 = arith.constant 1 : index
    %17 = memref.load %arg1[%c1_11, %c1_12] : memref<2x2xf32, #tpu.memory_space<smem>>
    %18 = vector.broadcast %17 : f32 to vector<8x128xf32>
    %19 = arith.mulf %3, %18 : vector<8x128xf32>
    %20 = arith.addf %16, %19 : vector<8x128xf32>
    %c1_13 = arith.constant 1 : index
    %21 = memref.load %arg2[%c1_13] : memref<2xf32, #tpu.memory_space<smem>>
    %22 = vector.broadcast %21 : f32 to vector<8x128xf32>
    %23 = arith.addf %20, %22 : vector<8x128xf32>
    %cst = arith.constant -6.000000e+01 : f32
    %cst_14 = arith.constant 6.000000e+01 : f32
    %24 = vector.broadcast %cst : f32 to vector<8x128xf32>
    %25 = arith.maximumf %24, %13 : vector<8x128xf32>
    %26 = vector.broadcast %cst_14 : f32 to vector<8x128xf32>
    %27 = arith.minimumf %26, %25 : vector<8x128xf32>
    %cst_15 = arith.constant -6.000000e+01 : f32
    %cst_16 = arith.constant 6.000000e+01 : f32
    %28 = vector.broadcast %cst_15 : f32 to vector<8x128xf32>
    %29 = arith.maximumf %28, %23 : vector<8x128xf32>
    %30 = vector.broadcast %cst_16 : f32 to vector<8x128xf32>
    %31 = arith.minimumf %30, %29 : vector<8x128xf32>
    %cst_17 = arith.constant 0.000000e+00 : f32
    %32 = vector.broadcast %cst_17 : f32 to vector<8x128xf32>
    %33 = arith.subf %32, %27 : vector<8x128xf32>
    %34 = math.exp %33 : vector<8x128xf32>
    %cst_18 = arith.constant 1.000000e+00 : f32
    %35 = vector.broadcast %cst_18 : f32 to vector<8x128xf32>
    %36 = arith.addf %35, %34 : vector<8x128xf32>
    %37 = tpu.reciprocal %36 {approx = true} : vector<8x128xf32> -> vector<8x128xf32>
    %cst_19 = arith.constant 0.000000e+00 : f32
    %38 = vector.broadcast %cst_19 : f32 to vector<8x128xf32>
    %39 = arith.subf %38, %31 : vector<8x128xf32>
    %40 = math.exp %39 : vector<8x128xf32>
    %cst_20 = arith.constant 1.000000e+00 : f32
    %41 = vector.broadcast %cst_20 : f32 to vector<8x128xf32>
    %42 = arith.addf %41, %40 : vector<8x128xf32>
    %43 = tpu.reciprocal %42 {approx = true} : vector<8x128xf32> -> vector<8x128xf32>
    %c0_21 = arith.constant 0 : index
    %44 = memref.load %arg3[%c0_21] : memref<2xf32, #tpu.memory_space<smem>>
    %45 = vector.broadcast %44 : f32 to vector<8x128xf32>
    %46 = arith.mulf %37, %45 : vector<8x128xf32>
    %c1_22 = arith.constant 1 : index
    %47 = memref.load %arg3[%c1_22] : memref<2xf32, #tpu.memory_space<smem>>
    %48 = vector.broadcast %47 : f32 to vector<8x128xf32>
    %49 = arith.mulf %43, %48 : vector<8x128xf32>
    %50 = arith.addf %46, %49 : vector<8x128xf32>
    %c0_23 = arith.constant 0 : index
    %51 = memref.load %arg4[%c0_23] : memref<1xf32, #tpu.memory_space<smem>>
    %52 = vector.broadcast %51 : f32 to vector<8x128xf32>
    %53 = arith.addf %50, %52 : vector<8x128xf32>
    %cst_24 = arith.constant 0.000000e+00 : f32
    %cst_25 = arith.constant 1.000000e+00 : f32
    %54 = vector.broadcast %cst_24 : f32 to vector<8x128xf32>
    %55 = arith.maximumf %54, %53 : vector<8x128xf32>
    %56 = vector.broadcast %cst_25 : f32 to vector<8x128xf32>
    %57 = arith.minimumf %56, %55 : vector<8x128xf32>
    %c0_26 = arith.constant 0 : index
    %c0_27 = arith.constant 0 : index
    %58 = vector.load %arg6[%c0_26, %c0_27] : memref<8x128xf32, #tpu.memory_space<vmem>>, vector<8x128xf32>
    tpu.vector_store %arg6[%c0_26, %c0_27], %57 {strides = array<i32>} : memref<8x128xf32, #tpu.memory_space<vmem>>, vector<8x128xf32>,
    return
  }
  func.func @transform_0(%arg0: i32) -> (i32, i32) {
    %c0_i32 = arith.constant 0 : i32
    %c0_i32_0 = arith.constant 0 : i32
    %c0_i32_1 = arith.constant 0 : i32
    return %c0_i32, %c0_i32_0 : i32, i32
  }
  func.func @transform_1(%arg0: i32) -> i32 {
    %c0_i32 = arith.constant 0 : i32
    %c0_i32_0 = arith.constant 0 : i32
    return %c0_i32 : i32
  }
  func.func @transform_2(%arg0: i32) -> i32 {
    %c0_i32 = arith.constant 0 : i32
    %c0_i32_0 = arith.constant 0 : i32
    return %c0_i32 : i32
  }
  func.func @transform_3(%arg0: i32) -> i32 {
    %c0_i32 = arith.constant 0 : i32
    %c0_i32_0 = arith.constant 0 : i32
    return %c0_i32 : i32
  }
  func.func @transform_4(%arg0: i32) -> (i32, i32, i32) {
    %c0_i32 = arith.constant 0 : i32
    %c0_i32_0 = arith.constant 0 : i32
    %c0_i32_1 = arith.constant 0 : i32
    return %c0_i32, %arg0, %c0_i32_0 : i32, i32, i32
  }
  func.func @transform_5(%arg0: i32) -> (i32, i32) {
    %c0_i32 = arith.constant 0 : i32
    %c0_i32_0 = arith.constant 0 : i32
    return %arg0, %c0_i32 : i32, i32
  }
}

</mosaic_0001>

<bundles_post_ra>
// kernel: simple_nn_forward.1
= control target key start
LH: loop header
LB: loop body
LE: loop exit
PB: predicated region body
PF: predicated region fallthrough
CT: control target
= control target key end

     0   :  { %11 = vsyncpa [#allocation4], 0  ;;  %s226_s0 = inlined_call_operand.vmem [shape: f32[2,2], index: 0, kind: input, shape index: {}]   ;;  %s227_s1 = inlined_call_operand.vmem [shape: f32[2], index: 1, kind: input, shape index: {}]   ;;  %s228_s2 = inlined_call_operand.vmem [shape: f32[2], index: 2, kind: input, shape index: {}]   ;;  %s229_s3 = inlined_call_operand.<no memory space> [shape: f32[1], index: 3, kind: input, shape index: {}]   ;;  %s230_s4 = inlined_call_operand.vmem [shape: f32[2,8,128], index: 4, kind: input, shape index: {}]   ;;  %s231_s5 = inlined_call_operand.vmem [shape: f32[8,128], index: 5, kind: output, shape index: {}]  }
   0x1   :  { %12 = vsyncpa [#allocation6], 0  ;;  %s29_s20 = sshll.u32 %s227_s1, 4  ;;  %s19_s23 = sshll.u32 %s226_s0, 4  ;;  %s30_s20 = int_to_ptr.vmem [resolvable:$true] %s29_s20  ;;  %s20_s23 = int_to_ptr.vmem [resolvable:$true] %s19_s23 }
   0x2   :  { %s132_s24 = scalar_lea.vmem %s30_s20, 16  ;;  %p137_p1 = scmp.lt.s32.totalorder %s30_s20, %s30_s20 }
   0x3   :  { %p133_p0 = scmp.ne.s32.totalorder %s30_s20, %s132_s24  ;;  %p138_p2 = scmp.lt.s32.totalorder %s132_s24, %s132_s24 }
   0x5   :  { %p139_p3 = por %p138_p2, %p137_p1 }
   0x7   :  { %p140_p4 = pnand %p139_p3, %p133_p0 }
   0x9   :  { %143 = shalt.err (!%p140_p4)
}
   0xa   :  { %s172_s25 = smov [#allocation5]   ;;  %s144_s26 = scalar_lea.vmem %s20_s23, 32 }
   0xb   :  { %32 = dma.vmem_to_smem %s30_s20, 16, %s172_s25, [#allocation6]  }
   0xc   :  { %p145_p5 = scmp.ne.s32.totalorder %s20_s23, %s144_s26  ;;  %p149_p6 = scmp.lt.s32.totalorder %s20_s23, %s20_s23 }
   0xd   :  { %p150_p7 = scmp.lt.s32.totalorder %s144_s26, %s144_s26 }
   0xf   :  { %p151_p8 = por %p150_p7, %p149_p6 }
  0x11   :  { %p152_p9 = pnand %p151_p8, %p145_p5 }
  0x13   :  { %155 = shalt.err (!%p152_p9)
}
  0x14   :  { %s173_s1 = smov [#allocation3]   ;;  %s39_s28 = sshll.u32 %s228_s2, 4  ;;  %s40_s28 = int_to_ptr.vmem [resolvable:$true] %s39_s28 }
  0x15   :  { %22 = dma.vmem_to_smem %s20_s23, 32, %s173_s1, [#allocation4]  }
  0x16   :  { %s156_s29 = scalar_lea.vmem %s40_s28, 16  ;;  %p161_p11 = scmp.lt.s32.totalorder %s40_s28, %s40_s28 }
  0x17   :  { %p157_p10 = scmp.ne.s32.totalorder %s40_s28, %s156_s29  ;;  %p162_p12 = scmp.lt.s32.totalorder %s156_s29, %s156_s29 }
  0x19   :  { %p163_p13 = por %p162_p12, %p161_p11 }
  0x1b   :  { %p164_p0 = pnand %p163_p13, %p157_p10 }
  0x1d   :  { %167 = shalt.err (!%p164_p0)
}
  0x1e   :  { %s174_s30 = smov [#allocation7]  }
  0x1f   :  { %42 = dma.vmem_to_smem %s40_s28, 16, %s174_s30, [#allocation6]  }
  0x20   :  { %168 = dma.done.wait [#allocation4], 32  }
  0x21   :  { %169 = vsyncadd [#allocation4], 4294967264 }
  0x22   :  { %170 = dma.done.wait [#allocation6], 32  }
  0x23   :  { %171 = vsyncadd [#allocation6], 4294967264 }
  0x24   :  { %56 = sfence }
  0x25   :  { %s60_s6 = sld [smem:[#allocation3]]  ;;  %v57_v0 = vld [vmem:[%s230_s4] sm:$0xff]  ;;  %v113_v1 = vld [vmem:[%s230_s4 + $0x8] sm:$0xff]  ;;  %v102_v32 = vstv %s229_s3 }
  0x26   :  { %s114_s7 = sld [smem:[#allocation3 + $0x80]] }
  0x27   :  { %s67_s8 = sld [smem:[#allocation5]] }
  0x28   :  { %s115_s9 = sld [smem:[#allocation3 + $0x1]] }
  0x29   :  { %s116_s11 = sld [smem:[#allocation3 + $0x81]] }
  0x2a   :  { %s117_s14 = sld [smem:[#allocation5 + $0x1]] }
  0x2b   :  { %v61_v2 = vstv %s60_s6  ;;  %s94_s4 = sld [smem:[#allocation7]] }
  0x2c   :  { %v62_v3 = vmul.f32 %v61_v2, %v57_v0  ;;  %v64_v4 = vstv %s114_s7  ;;  %s120_s15 = sld [smem:[#allocation7 + $0x1]] }
  0x2d   :  { %v65_v5 = vmul.f32 %v113_v1, %v64_v4  ;;  %v68_v6 = vstv %s67_s8 }
  0x2e   :  { %v71_v7 = vstv %s115_s9 }
  0x2f   :  { %v66_v8 = vadd.f32 %v65_v5, %v62_v3  ;;  %v72_v9 = vmul.f32 %v71_v7, %v57_v0  ;;  %v74_v10 = vstv %s116_s11 }
  0x30   :  { %v75_v11 = vmul.f32 %v113_v1, %v74_v10  ;;  %v78_v13 = vstv %s117_s14 }
  0x31   :  { %v69_v12 = vadd.f32 %v68_v6, %v66_v8  ;;  %v95_v26 = vstv %s94_s4 }
  0x32   :  { %v76_v14 = vadd.f32 %v75_v11, %v72_v9  ;;  %v98_v28 = vstv %s120_s15 }
  0x33   :  { %v118_v15 = vclamps-f32 %v69_v12, 60.0 }
  0x34   :  { %v79_v16 = vadd.f32 %v78_v13, %v76_v14 }
  0x35   :  { %v84_v17 = vsub.f32 0.0, %v118_v15 }
  0x36   :  { %v119_v18 = vclamps-f32 %v79_v16, 60.0 }
  0x37   :  { %v85_v19 = vmul.f32 1.442695, %v84_v17 }
  0x38   :  { %v89_v20 = vsub.f32 0.0, %v119_v18 }
  0x39   :  { %124 = vpow2.f32 %v85_v19 }
  0x3a   :  { %v90_v21 = vmul.f32 1.442695, %v89_v20 }
  0x3c   :  { %126 = vpow2.f32 %v90_v21 }
  0x46   :  { %v125_v22 = vpop.eup %124 }
  0x47   :  { %v87_v23 = vadd.f32 1.0, %v125_v22 }
  0x49   :  { %v127_v24 = vpop.eup %126  ;;  %128 = vrcp.f32 %v87_v23 }
  0x4a   :  { %v92_v25 = vadd.f32 1.0, %v127_v24 }
  0x4c   :  { %130 = vrcp.f32 %v92_v25 }
  0x56   :  { %v129_v27 = vpop.eup %128 }
  0x57   :  { %v96_v29 = vmul.f32 %v129_v27, %v95_v26 }
  0x59   :  { %v131_v30 = vpop.eup %130 }
  0x5a   :  { %v99_v31 = vmul.f32 %v131_v30, %v98_v28 }
  0x5c   :  { %v100_v33 = vadd.f32 %v99_v31, %v96_v29 }
  0x5e   :  { %v103_v34 = vadd.f32 %v102_v32, %v100_v33 }
  0x60   :  { %v104_v35 = vmax.f32 %v103_v34, 0.0 }
  0x62   :  { %v105_v36 = vmin.f32 %v104_v35, 1.0 }
  0x64   :  { %106 = vst [vmem:[%s231_s5] sm:$0xff] %v105_v36 }
  0x65   :  { %111 = vsyncpa [#allocation4], 1 }
  0x66   :  { %112 = vsyncpa [#allocation6], 1 }

</bundles_post_ra>
